<compile_context>
chip_gen: v7x
topology: tpu7x:2x2x1
jax: 0.10.0
libtpu: 0.0.40
codegen_flags: <defaults>
</compile_context>

<pallas_src>
import functools

import jax
import jax.numpy as jnp
from jax.experimental import pallas as pl
from jax.experimental.pallas import tpu as pltpu

INPUT_DIM = 4
OUTPUT_DIM = 3


def _actor_kernel(w_ref, b_ref, x_ref, o_ref, *, in_dim, out_dim):
    """MockActor forward on one lane/sublane-dense batch tile.

    w_ref: (out_dim*in_dim,) f32 in SMEM, PyTorch nn.Linear [out, in] row-major.
    b_ref: (out_dim,)        f32 in SMEM.
    x_ref: (in_dim,  rows, 128) VMEM  (batch spread over sublanes x lanes).
    o_ref: (out_dim, rows, 128) f32 VMEM.
    """
    # Hoist all SMEM scalar splats out of the per-output loops (loop-invariant).
    w = [w_ref[i] for i in range(out_dim * in_dim)]
    b = [b_ref[j] for j in range(out_dim)]

    # Dense (rows, 128) feature planes: full 8x128 vreg utilization per op.
    xk = [x_ref[k].astype(jnp.float32) for k in range(in_dim)]

    # Linear layer: scalar-broadcast multiply-adds on the VPU (no MXU for a
    # 96-MAC problem); bias folded into the accumulator init.
    logits = []
    for j in range(out_dim):
        acc = xk[0] * w[j * in_dim] + b[j]
        for k in range(1, in_dim):
            acc = acc + xk[k] * w[j * in_dim + k]
        logits.append(acc)

    # Numerically stable softmax across the out_dim logit planes: pairwise
    # elementwise max/add (VPU) + exp (EUP); no XLU cross-lane reduction.
    m = logits[0]
    for j in range(1, out_dim):
        m = jnp.maximum(m, logits[j])
    e = [jnp.exp(l - m) for l in logits]
    denom = e[0]
    for j in range(1, out_dim):
        denom = denom + e[j]
    # Exact division (NOT approx reciprocal) so rows sum to 1 to f32 precision.
    inv = 1.0 / denom
    for j in range(out_dim):
        o_ref[j] = (e[j] * inv).astype(o_ref.dtype)


@functools.partial(jax.jit, static_argnames=("tile_b", "batch_major_output"))
def mock_actor_forward(x, weight, bias, *, tile_b=128 * 1024, batch_major_output=True):
    """softmax(x @ weight.T + bias, axis=-1) — matches MockActor.forward.

    x:      (B, in_dim)        float32 or bfloat16
    weight: (out_dim, in_dim)  (PyTorch nn.Linear layout)
    bias:   (out_dim,)
    returns (B, out_dim) float32, or (out_dim, B) if batch_major_output=False
            (lets layout-agnostic consumers skip the output-transpose HBM pass).
    """
    B, in_dim = x.shape
    out_dim = weight.shape[0]

    # bf16 is DMA'd as-is (halves input HBM traffic) and upcast in-kernel;
    # anything else computes in f32.
    if x.dtype not in (jnp.float32, jnp.bfloat16):
        x = x.astype(jnp.float32)
    x_bytes = 2 if x.dtype == jnp.bfloat16 else 4

    # Lane tile: multiple of 1024 so the sublane dim (tile_b//128) is a multiple
    # of 8; capped at 512K lanes so the double-buffered f32 in+out footprint
    # stays well inside v7x's 64 MiB physical VMEM.
    tile_b = max(1024, (int(tile_b) // 1024) * 1024)
    tile_b = min(tile_b, 512 * 1024)

    if B > tile_b:
        b_padded = pl.cdiv(B, tile_b) * tile_b      # divisible grid: no ragged block
        tb = tile_b
    else:
        b_padded = pl.cdiv(B, 128) * 128            # single lane-dense block
        tb = b_padded
    n_tiles = b_padded // tb
    rows_tile = tb // 128

    # Double-buffered in+out tiles; raise scoped VMEM only when a big tile needs
    # it (v5e default is 16 MiB), and stay well under v7x's 64 MiB physical.
    vmem_bytes = 2 * tb * (in_dim * x_bytes + out_dim * 4)
    vmem_limit = min(vmem_bytes + (8 << 20), 48 << 20) if vmem_bytes > (12 << 20) else None

    # Batch onto the lane axis: transpose+pad+reshape is a single XLA copy of x
    # (the reshape is free); allow_input_fusion below lets XLA fold that copy
    # into the pallas_call operand instead of a separate HBM round trip.
    xt = jnp.pad(x.T, ((0, 0), (0, b_padded - B)))
    x3 = xt.reshape(in_dim, b_padded // 128, 128)

    w_flat = weight.astype(jnp.float32).reshape(-1)   # (out_dim*in_dim,)
    b_flat = bias.astype(jnp.float32).reshape(-1)     # (out_dim,)

    kernel = functools.partial(_actor_kernel, in_dim=in_dim, out_dim=out_dim)

    out3 = pl.pallas_call(
        kernel,
        out_shape=jax.ShapeDtypeStruct((out_dim, b_padded // 128, 128), jnp.float32),
        grid_spec=pltpu.PrefetchScalarGridSpec(
            num_scalar_prefetch=0,
            grid=(n_tiles,),
            in_specs=[
                pl.BlockSpec(memory_space=pltpu.MemorySpace.SMEM),          # flat weight
                pl.BlockSpec(memory_space=pltpu.MemorySpace.SMEM),          # bias
                pl.BlockSpec((in_dim, rows_tile, 128), lambda i: (0, i, 0)),  # x tile
            ],
            out_specs=pl.BlockSpec((out_dim, rows_tile, 128), lambda i: (0, i, 0)),
        ),
        compiler_params=pltpu.CompilerParams(
            # Batch tiles pipeline and may shard across v7x's two TensorCores;
            # switch to pltpu.CORE_PARALLEL on v7x if "parallel" doesn't split.
            dimension_semantics=("parallel",),
            allow_input_fusion=[False, False, True],
            vmem_limit_bytes=vmem_limit,
        ),
    )(w_flat, b_flat, x3)

    out_t = out3.reshape(out_dim, b_padded)[:, :B]
    if batch_major_output:
        return out_t.T          # (B, out_dim) — matches the PyTorch module
    return out_t                # (out_dim, B) — avoids the output-transpose pass


def init_params(key, input_dim, output_dim):
    # nn.Linear-style init: U(-1/sqrt(in), 1/sqrt(in)); weight in PyTorch [out, in] layout.
    kw, kb = jax.random.split(key)
    bound = 1.0 / jnp.sqrt(jnp.float32(input_dim))
    weight = jax.random.uniform(kw, (output_dim, input_dim), jnp.float32, -bound, bound)
    bias = jax.random.uniform(kb, (output_dim,), jnp.float32, -bound, bound)
    return weight, bias


def _reference(x, weight, bias):
    # Elementwise f32 reference (avoids TPU default matmul precision downcast).
    logits = jnp.sum(x[:, None, :].astype(jnp.float32) * weight[None, :, :], axis=-1) + bias
    return jax.nn.softmax(logits, axis=-1)


if __name__ == "__main__":
    key = jax.random.PRNGKey(0)
    k_p, k_x, k_x2, k_x3 = jax.random.split(key, 4)

    weight, bias = init_params(k_p, INPUT_DIM, OUTPUT_DIM)

    # Small batch: single lane-dense (padded to 128) block.
    x = jax.random.normal(k_x, (8, INPUT_DIM), dtype=jnp.float32)
    out = jax.block_until_ready(mock_actor_forward(x, weight, bias))
    assert out.shape == (8, OUTPUT_DIM)
    assert jnp.allclose(jnp.sum(out, axis=-1), 1.0, atol=1e-5)
    assert jnp.allclose(out, _reference(x, weight, bias), atol=1e-5, rtol=1e-5)

    # Larger ragged batch: tiled, padded, multi-block "parallel" grid path.
    x2 = jax.random.normal(k_x2, (3000, INPUT_DIM), dtype=jnp.float32)
    out2 = jax.block_until_ready(mock_actor_forward(x2, weight, bias, tile_b=1024))
    assert out2.shape == (3000, OUTPUT_DIM)
    assert jnp.allclose(jnp.sum(out2, axis=-1), 1.0, atol=1e-5)
    assert jnp.allclose(out2, _reference(x2, weight, bias), atol=1e-5, rtol=1e-5)

    # bf16 input path: DMA'd as bf16, upcast to f32 inside the kernel.
    x3 = jax.random.normal(k_x3, (256, INPUT_DIM), dtype=jnp.float32).astype(jnp.bfloat16)
    out3 = jax.block_until_ready(mock_actor_forward(x3, weight, bias))
    assert out3.shape == (256, OUTPUT_DIM)
    assert jnp.allclose(out3, _reference(x3.astype(jnp.float32), weight, bias),
                        atol=1e-4, rtol=1e-4)

    print("KERNEL_OK")
</pallas_src>

<mosaic_0001>
module attributes {stable_mosaic.version = 11 : i64} {
  func.func @_actor_kernel(%arg0: i32, %arg1: memref<12xf32, #tpu.memory_space<smem>>, %arg2: memref<3xf32, #tpu.memory_space<smem>>, %arg3: memref<4x1x128xf32, #tpu.memory_space<vmem>>, %arg4: memref<3x1x128xf32, #tpu.memory_space<vmem>>) attributes {dimension_semantics = [#tpu.dimension_semantics<parallel>], iteration_bounds = array<i64: 1>, scalar_prefetch = 0 : i64, scratch_operands = 0 : i64, tpu.core_type = #tpu.core_type<tc>, window_params = [{transform_indices = @transform_0, window_bounds = array<i64: 12>}, {transform_indices = @transform_1, window_bounds = array<i64: 3>}, {transform_indices = @transform_2, window_bounds = array<i64: 4, 1, 128>}, {transform_indices = @transform_3, window_bounds = array<i64: 3, 1, 128>}]} {
    %c0 = arith.constant 0 : index
    %0 = memref.load %arg1[%c0] : memref<12xf32, #tpu.memory_space<smem>>
    %c1 = arith.constant 1 : index
    %1 = memref.load %arg1[%c1] : memref<12xf32, #tpu.memory_space<smem>>
    %c2 = arith.constant 2 : index
    %2 = memref.load %arg1[%c2] : memref<12xf32, #tpu.memory_space<smem>>
    %c3 = arith.constant 3 : index
    %3 = memref.load %arg1[%c3] : memref<12xf32, #tpu.memory_space<smem>>
    %c4 = arith.constant 4 : index
    %4 = memref.load %arg1[%c4] : memref<12xf32, #tpu.memory_space<smem>>
    %c5 = arith.constant 5 : index
    %5 = memref.load %arg1[%c5] : memref<12xf32, #tpu.memory_space<smem>>
    %c6 = arith.constant 6 : index
    %6 = memref.load %arg1[%c6] : memref<12xf32, #tpu.memory_space<smem>>
    %c7 = arith.constant 7 : index
    %7 = memref.load %arg1[%c7] : memref<12xf32, #tpu.memory_space<smem>>
    %c8 = arith.constant 8 : index
    %8 = memref.load %arg1[%c8] : memref<12xf32, #tpu.memory_space<smem>>
    %c9 = arith.constant 9 : index
    %9 = memref.load %arg1[%c9] : memref<12xf32, #tpu.memory_space<smem>>
    %c10 = arith.constant 10 : index
    %10 = memref.load %arg1[%c10] : memref<12xf32, #tpu.memory_space<smem>>
    %c11 = arith.constant 11 : index
    %11 = memref.load %arg1[%c11] : memref<12xf32, #tpu.memory_space<smem>>
    %c0_0 = arith.constant 0 : index
    %12 = memref.load %arg2[%c0_0] : memref<3xf32, #tpu.memory_space<smem>>
    %c1_1 = arith.constant 1 : index
    %13 = memref.load %arg2[%c1_1] : memref<3xf32, #tpu.memory_space<smem>>
    %c2_2 = arith.constant 2 : index
    %14 = memref.load %arg2[%c2_2] : memref<3xf32, #tpu.memory_space<smem>>
    %c0_3 = arith.constant 0 : index
    %c0_4 = arith.constant 0 : index
    %c0_5 = arith.constant 0 : index
    %15 = vector.load %arg3[%c0_3, %c0_4, %c0_5] : memref<4x1x128xf32, #tpu.memory_space<vmem>>, vector<1x1x128xf32>
    %16 = vector.shape_cast %15 : vector<1x1x128xf32> to vector<1x128xf32>
    %c1_6 = arith.constant 1 : index
    %c0_7 = arith.constant 0 : index
    %c0_8 = arith.constant 0 : index
    %17 = vector.load %arg3[%c1_6, %c0_7, %c0_8] : memref<4x1x128xf32, #tpu.memory_space<vmem>>, vector<1x1x128xf32>
    %18 = vector.shape_cast %17 : vector<1x1x128xf32> to vector<1x128xf32>
    %c2_9 = arith.constant 2 : index
    %c0_10 = arith.constant 0 : index
    %c0_11 = arith.constant 0 : index
    %19 = vector.load %arg3[%c2_9, %c0_10, %c0_11] : memref<4x1x128xf32, #tpu.memory_space<vmem>>, vector<1x1x128xf32>
    %20 = vector.shape_cast %19 : vector<1x1x128xf32> to vector<1x128xf32>
    %c3_12 = arith.constant 3 : index
    %c0_13 = arith.constant 0 : index
    %c0_14 = arith.constant 0 : index
    %21 = vector.load %arg3[%c3_12, %c0_13, %c0_14] : memref<4x1x128xf32, #tpu.memory_space<vmem>>, vector<1x1x128xf32>
    %22 = vector.shape_cast %21 : vector<1x1x128xf32> to vector<1x128xf32>
    %23 = vector.broadcast %0 : f32 to vector<1x128xf32>
    %24 = arith.mulf %16, %23 : vector<1x128xf32>
    %25 = vector.broadcast %12 : f32 to vector<1x128xf32>
    %26 = arith.addf %24, %25 : vector<1x128xf32>
    %27 = vector.broadcast %1 : f32 to vector<1x128xf32>
    %28 = arith.mulf %18, %27 : vector<1x128xf32>
    %29 = arith.addf %26, %28 : vector<1x128xf32>
    %30 = vector.broadcast %2 : f32 to vector<1x128xf32>
    %31 = arith.mulf %20, %30 : vector<1x128xf32>
    %32 = arith.addf %29, %31 : vector<1x128xf32>
    %33 = vector.broadcast %3 : f32 to vector<1x128xf32>
    %34 = arith.mulf %22, %33 : vector<1x128xf32>
    %35 = arith.addf %32, %34 : vector<1x128xf32>
    %36 = vector.broadcast %4 : f32 to vector<1x128xf32>
    %37 = arith.mulf %16, %36 : vector<1x128xf32>
    %38 = vector.broadcast %13 : f32 to vector<1x128xf32>
    %39 = arith.addf %37, %38 : vector<1x128xf32>
    %40 = vector.broadcast %5 : f32 to vector<1x128xf32>
    %41 = arith.mulf %18, %40 : vector<1x128xf32>
    %42 = arith.addf %39, %41 : vector<1x128xf32>
    %43 = vector.broadcast %6 : f32 to vector<1x128xf32>
    %44 = arith.mulf %20, %43 : vector<1x128xf32>
    %45 = arith.addf %42, %44 : vector<1x128xf32>
    %46 = vector.broadcast %7 : f32 to vector<1x128xf32>
    %47 = arith.mulf %22, %46 : vector<1x128xf32>
    %48 = arith.addf %45, %47 : vector<1x128xf32>
    %49 = vector.broadcast %8 : f32 to vector<1x128xf32>
    %50 = arith.mulf %16, %49 : vector<1x128xf32>
    %51 = vector.broadcast %14 : f32 to vector<1x128xf32>
    %52 = arith.addf %50, %51 : vector<1x128xf32>
    %53 = vector.broadcast %9 : f32 to vector<1x128xf32>
    %54 = arith.mulf %18, %53 : vector<1x128xf32>
    %55 = arith.addf %52, %54 : vector<1x128xf32>
    %56 = vector.broadcast %10 : f32 to vector<1x128xf32>
    %57 = arith.mulf %20, %56 : vector<1x128xf32>
    %58 = arith.addf %55, %57 : vector<1x128xf32>
    %59 = vector.broadcast %11 : f32 to vector<1x128xf32>
    %60 = arith.mulf %22, %59 : vector<1x128xf32>
    %61 = arith.addf %58, %60 : vector<1x128xf32>
    %62 = arith.maximumf %35, %48 : vector<1x128xf32>
    %63 = arith.maximumf %62, %61 : vector<1x128xf32>
    %64 = arith.subf %35, %63 : vector<1x128xf32>
    %65 = math.exp %64 : vector<1x128xf32>
    %66 = arith.subf %48, %63 : vector<1x128xf32>
    %67 = math.exp %66 : vector<1x128xf32>
    %68 = arith.subf %61, %63 : vector<1x128xf32>
    %69 = math.exp %68 : vector<1x128xf32>
    %70 = arith.addf %65, %67 : vector<1x128xf32>
    %71 = arith.addf %70, %69 : vector<1x128xf32>
    %cst = arith.constant 1.000000e+00 : f32
    %72 = vector.broadcast %cst : f32 to vector<1x128xf32>
    %73 = arith.divf %72, %71 : vector<1x128xf32>
    %74 = arith.mulf %65, %73 : vector<1x128xf32>
    %c0_15 = arith.constant 0 : index
    %c0_16 = arith.constant 0 : index
    %c0_17 = arith.constant 0 : index
    %75 = vector.load %arg4[%c0_15, %c0_16, %c0_17] : memref<3x1x128xf32, #tpu.memory_space<vmem>>, vector<1x1x128xf32>
    %76 = vector.shape_cast %75 : vector<1x1x128xf32> to vector<1x128xf32>
    %77 = vector.shape_cast %74 : vector<1x128xf32> to vector<1x1x128xf32>
    tpu.vector_store %arg4[%c0_15, %c0_16, %c0_17], %77 {strides = array<i32>} : memref<3x1x128xf32, #tpu.memory_space<vmem>>, vector<1x1x128xf32>,
    %78 = arith.mulf %67, %73 : vector<1x128xf32>
    %c1_18 = arith.constant 1 : index
    %c0_19 = arith.constant 0 : index
    %c0_20 = arith.constant 0 : index
    %79 = vector.load %arg4[%c1_18, %c0_19, %c0_20] : memref<3x1x128xf32, #tpu.memory_space<vmem>>, vector<1x1x128xf32>
    %80 = vector.shape_cast %79 : vector<1x1x128xf32> to vector<1x128xf32>
    %81 = vector.shape_cast %78 : vector<1x128xf32> to vector<1x1x128xf32>
    tpu.vector_store %arg4[%c1_18, %c0_19, %c0_20], %81 {strides = array<i32>} : memref<3x1x128xf32, #tpu.memory_space<vmem>>, vector<1x1x128xf32>,
    %82 = arith.mulf %69, %73 : vector<1x128xf32>
    %c2_21 = arith.constant 2 : index
    %c0_22 = arith.constant 0 : index
    %c0_23 = arith.constant 0 : index
    %83 = vector.load %arg4[%c2_21, %c0_22, %c0_23] : memref<3x1x128xf32, #tpu.memory_space<vmem>>, vector<1x1x128xf32>
    %84 = vector.shape_cast %83 : vector<1x1x128xf32> to vector<1x128xf32>
    %85 = vector.shape_cast %82 : vector<1x128xf32> to vector<1x1x128xf32>
    tpu.vector_store %arg4[%c2_21, %c0_22, %c0_23], %85 {strides = array<i32>} : memref<3x1x128xf32, #tpu.memory_space<vmem>>, vector<1x1x128xf32>,
    return
  }
  func.func @transform_0(%arg0: i32) -> i32 {
    %c0_i32 = arith.constant 0 : i32
    %c0_i32_0 = arith.constant 0 : i32
    return %c0_i32 : i32
  }
  func.func @transform_1(%arg0: i32) -> i32 {
    %c0_i32 = arith.constant 0 : i32
    %c0_i32_0 = arith.constant 0 : i32
    return %c0_i32 : i32
  }
  func.func @transform_2(%arg0: i32) -> (i32, i32, i32) {
    %c0_i32 = arith.constant 0 : i32
    %c0_i32_0 = arith.constant 0 : i32
    %c0_i32_1 = arith.constant 0 : i32
    return %c0_i32, %arg0, %c0_i32_0 : i32, i32, i32
  }
  func.func @transform_3(%arg0: i32) -> (i32, i32, i32) {
    %c0_i32 = arith.constant 0 : i32
    %c0_i32_0 = arith.constant 0 : i32
    %c0_i32_1 = arith.constant 0 : i32
    return %c0_i32, %arg0, %c0_i32_0 : i32, i32, i32
  }
}

</mosaic_0001>

<bundles_post_ra>
// kernel: mock_actor_forward.1
= control target key start
LH: loop header
LB: loop body
LE: loop exit
PB: predicated region body
PF: predicated region fallthrough
CT: control target
= control target key end

     0   :  { %8 = vsyncpa [#allocation3], 0  ;;  %s249_s0 = inlined_call_operand.vmem [shape: f32[12], index: 0, kind: input, shape index: {}]   ;;  %s250_s1 = inlined_call_operand.vmem [shape: f32[3], index: 1, kind: input, shape index: {}]   ;;  %s251_s2 = inlined_call_operand.vmem [shape: f32[4,1,128], index: 2, kind: input, shape index: {}]   ;;  %s252_s3 = inlined_call_operand.vmem [shape: f32[3,1,128], index: 3, kind: output, shape index: {}]  }
   0x1   :  { %s16_s14 = sshll.u32 %s249_s0, 4  ;;  %s17_s14 = int_to_ptr.vmem [resolvable:$true] %s16_s14 }
   0x2   :  { %9 = vsyncpa [#allocation5], 0  ;;  %s26_s17 = sshll.u32 %s250_s1, 4  ;;  %s157_s18 = scalar_lea.vmem %s17_s14, 16  ;;  %s27_s17 = int_to_ptr.vmem [resolvable:$true] %s26_s17 }
   0x3   :  { %p158_p0 = scmp.ne.s32.totalorder %s17_s14, %s157_s18  ;;  %p162_p1 = scmp.lt.s32.totalorder %s17_s14, %s17_s14 }
   0x4   :  { %p163_p2 = scmp.lt.s32.totalorder %s157_s18, %s157_s18 }
   0x6   :  { %p164_p3 = por %p163_p2, %p162_p1 }
   0x8   :  { %p165_p4 = pnand %p164_p3, %p158_p0 }
   0xa   :  { %168 = shalt.err (!%p165_p4)
}
   0xb   :  { %s185_s19 = smov [#allocation2]   ;;  %s169_s20 = scalar_lea.vmem %s27_s17, 16 }
   0xc   :  { %19 = dma.vmem_to_smem %s17_s14, 16, %s185_s19, [#allocation3]  }
   0xd   :  { %p170_p5 = scmp.ne.s32.totalorder %s27_s17, %s169_s20  ;;  %p174_p6 = scmp.lt.s32.totalorder %s27_s17, %s27_s17 }
   0xe   :  { %p175_p7 = scmp.lt.s32.totalorder %s169_s20, %s169_s20 }
  0x10   :  { %p176_p8 = por %p175_p7, %p174_p6 }
  0x12   :  { %p177_p9 = pnand %p176_p8, %p170_p5 }
  0x14   :  { %180 = shalt.err (!%p177_p9)
}
  0x15   :  { %s186_s0 = smov [#allocation4]  }
  0x16   :  { %29 = dma.vmem_to_smem %s27_s17, 16, %s186_s0, [#allocation5]  }
  0x17   :  { %181 = dma.done.wait [#allocation3], 16  }
  0x18   :  { %182 = vsyncadd [#allocation3], 4294967280 }
  0x19   :  { %183 = dma.done.wait [#allocation5], 16  }
  0x1a   :  { %184 = vsyncadd [#allocation5], 4294967280 }
  0x1b   :  { %38 = sfence }
  0x1c   :  { %s39_s1 = sld [smem:[#allocation2]]  ;;  %s129_s21 = sld [smem:[#allocation2 + $0x1]]  ;;  %v54_v0 = vld [vmem:[%s251_s2] sm:$0x1]  ;;  %v142_v1 = vld [vmem:[%s251_s2 + $0x1] sm:$0x1] }
  0x1d   :  { %s130_s22 = sld [smem:[#allocation2 + $0x2]]  ;;  %s213_s23 = sld [smem:[#allocation2 + $0x3]]  ;;  %v143_v4 = vld [vmem:[%s251_s2 + $0x2] sm:$0x1]  ;;  %v144_v20 = vld [vmem:[%s251_s2 + $0x3] sm:$0x1] }
  0x1e   :  { %s132_s24 = sld [smem:[#allocation2 + $0x4]]  ;;  %s133_s25 = sld [smem:[#allocation2 + $0x5]] }
  0x1f   :  { %s215_s26 = sld [smem:[#allocation2 + $0x6]]  ;;  %s217_s27 = sld [smem:[#allocation2 + $0x7]] }
  0x20   :  { %s136_s28 = sld [smem:[#allocation2 + $0x8]]  ;;  %s137_s29 = sld [smem:[#allocation2 + $0x9]] }
  0x21   :  { %s219_s30 = sld [smem:[#allocation2 + $0xa]]  ;;  %s221_s4 = sld [smem:[#allocation2 + $0xb]] }
  0x22   :  { %s51_s7 = sld [smem:[#allocation4]]  ;;  %s140_s8 = sld [smem:[#allocation4 + $0x1]]  ;;  %v61_v2 = vstv %s39_s1  ;;  %v65_v3 = vstv %s129_s21 }
  0x23   :  { %s141_s11 = sld [smem:[#allocation4 + $0x2]]  ;;  %v68_v5 = vstv %s130_s22  ;;  %v62_v8 = vmul.f32 %v61_v2, %v54_v0  ;;  %v66_v9 = vmul.f32 %v142_v1, %v65_v3  ;;  %v71_v13 = vstv %s213_s23 }
  0x24   :  { %v74_v6 = vstv %s132_s24  ;;  %v78_v7 = vstv %s133_s25  ;;  %v69_v12 = vmul.f32 %v143_v4, %v68_v5  ;;  %v72_v32 = vmul.f32 %v144_v20, %v71_v13 }
  0x25   :  { %v75_v10 = vmul.f32 %v74_v6, %v54_v0  ;;  %v81_v11 = vstv %s215_s26  ;;  %v79_v16 = vmul.f32 %v142_v1, %v78_v7  ;;  %v84_v17 = vstv %s217_s27 }
  0x26   :  { %v87_v14 = vstv %s136_s28  ;;  %v91_v15 = vstv %s137_s29  ;;  %v82_v23 = vmul.f32 %v143_v4, %v81_v11  ;;  %v85_v34 = vmul.f32 %v144_v20, %v84_v17 }
  0x27   :  { %v88_v18 = vmul.f32 %v87_v14, %v54_v0  ;;  %v94_v19 = vstv %s219_s30  ;;  %v92_v24 = vmul.f32 %v142_v1, %v91_v15  ;;  %v97_v28 = vstv %s221_s4 }
  0x28   :  { %v63_v21 = vstv %s51_s7  ;;  %v76_v22 = vstv %s140_s8  ;;  %v95_v30 = vmul.f32 %v143_v4, %v94_v19  ;;  %v98_v36 = vmul.f32 %v144_v20, %v97_v28 }
  0x29   :  { %v64_v25 = vadd.f32 %v63_v21, %v62_v8  ;;  %v77_v26 = vadd.f32 %v76_v22, %v75_v10  ;;  %v89_v27 = vstv %s141_s11 }
  0x2a   :  { %v90_v29 = vadd.f32 %v89_v27, %v88_v18 }
  0x2b   :  { %v67_v31 = vadd.f32 %v66_v9, %v64_v25  ;;  %v80_v33 = vadd.f32 %v79_v16, %v77_v26 }
  0x2c   :  { %v93_v35 = vadd.f32 %v92_v24, %v90_v29 }
  0x2d   :  { %v70_v37 = vadd.f32 %v69_v12, %v67_v31  ;;  %v83_v38 = vadd.f32 %v82_v23, %v80_v33 }
  0x2e   :  { %v96_v39 = vadd.f32 %v95_v30, %v93_v35 }
  0x2f   :  { %v73_v40 = vadd.f32 %v72_v32, %v70_v37  ;;  %v86_v41 = vadd.f32 %v85_v34, %v83_v38 }
  0x30   :  { %v99_v42 = vadd.f32 %v98_v36, %v96_v39 }
  0x31   :  { %v100_v43 = vmax.f32 %v73_v40, %v86_v41 }
  0x33   :  { %v101_v44 = vmax.f32 %v100_v43, %v99_v42 }
  0x35   :  { %v102_v45 = vsub.f32 %v73_v40, %v101_v44  ;;  %v105_v46 = vsub.f32 %v86_v41, %v101_v44  ;;  %v108_v47 = vsub.f32 %v99_v42, %v101_v44 }
  0x37   :  { %v103_v48 = vmul.f32 1.442695, %v102_v45  ;;  %v106_v49 = vmul.f32 1.442695, %v105_v46  ;;  %v109_v50 = vmul.f32 1.442695, %v108_v47 }
  0x39   :  { %149 = vpow2.f32 %v103_v48 }
  0x3a   :  { %151 = vpow2.f32 %v106_v49 }
  0x3b   :  { %153 = vpow2.f32 %v109_v50 }
  0x43   :  { %v150_v51 = vpop.eup %149 }
  0x44   :  { %v152_v52 = vpop.eup %151 }
  0x45   :  { %v154_v53 = vpop.eup %153  ;;  %v111_v54 = vadd.f32 %v152_v52, %v150_v51 }
  0x47   :  { %v112_v55 = vadd.f32 %v154_v53, %v111_v54 }
  0x49   :  { %155 = vrcp.f32 %v112_v55 }
  0x53   :  { %v156_v56 = vpop.eup %155 }
  0x54   :  { %v115_v57 = vmul.f32 %v156_v56, %v150_v51  ;;  %v117_v58 = vmul.f32 %v156_v56, %v152_v52  ;;  %v120_v59 = vmul.f32 %v156_v56, %v154_v53 }
  0x56   :  { %116 = vst [vmem:[%s252_s3] sm:$0x1] %v115_v57  ;;  %145 = vst [vmem:[%s252_s3 + $0x1] sm:$0x1] %v117_v58 }
  0x57   :  { %146 = vst [vmem:[%s252_s3 + $0x2] sm:$0x1] %v120_v59 }
  0x58   :  { %127 = vsyncpa [#allocation3], 1 }
  0x59   :  { %128 = vsyncpa [#allocation5], 1 }

</bundles_post_ra>
